<compile_context>
chip_gen: v7x
topology: tpu7x:2x2x1
jax: 0.10.0
libtpu: 0.0.40
codegen_flags: <defaults>
</compile_context>

<pallas_src>
import math
import numpy as np
import jax
import jax.numpy as jnp
from jax.experimental import pallas as pl
from jax.experimental.pallas import tpu as pltpu


# --------------------------- Pallas kernel ----------------------------------
def _block2_fused_kernel(
    k13_ref, k9_ref,                 # Kron interpolation blocks (169, T), (81, T)
    xf_ref, xr_ref,                  # original fea / feart blocks (1, C, T)
    c0f_ref, c1f_ref,                # fea APL small branch tensors (1, C, 169)/(1, C, 81)
    c0r_ref, c1r_ref,                # feart APL small branch tensors
    wf2_ref, bf_ref,                 # fus-conv x-slice (C, C) + folded bias (C, 1), fea APL
    wr2_ref, br_ref,                 # same for feart APL
    w1_ref, b1_ref,                  # shared conv1 weight (C, C) + bias (C, 1)
    fin_ref, out2_ref):              # outputs (1, C, T)
    f32 = jnp.float32
    k13 = k13_ref[...]
    k9 = k9_ref[...]

    def apl(c0_ref, c1_ref, x_ref, w2_ref, b_ref):
        # Upsampled pooled-branch contributions (channel mixing + BN scale
        # already folded into the small tensors in glue).
        y = jnp.dot(c0_ref[0], k13, preferred_element_type=f32)
        y = y + jnp.dot(c1_ref[0], k9, preferred_element_type=f32)
        # fus 1x1-conv contribution of the full-resolution input.
        y = y + jnp.dot(w2_ref[...], x_ref[0], preferred_element_type=f32)
        return jnp.maximum(y + b_ref[...], 0.0)          # BN folded; ReLU

    infea = apl(c0f_ref, c1f_ref, xf_ref, wf2_ref, bf_ref)
    infeart = apl(c0r_ref, c1r_ref, xr_ref, wr2_ref, br_ref)

    # block2 tail, using linearity of conv1: three matmuls total.
    w1 = w1_ref[...]
    b1 = b1_ref[...]
    a_rt = jnp.dot(w1, infeart, preferred_element_type=f32)
    a_f = jnp.dot(w1, infea, preferred_element_type=f32)
    gate = jax.nn.sigmoid(a_rt - a_f + b1)                # sigmoid(conv1(infeart - infea))
    new_sinrt = (infeart - infea) * gate
    b_ns = jnp.dot(w1, new_sinrt, preferred_element_type=f32)
    out2_ref[0] = b_ns + b1                               # conv1(new_sinrt)
    fin_ref[0] = a_rt + b_ns + b1                         # conv1(infeart + new_sinrt)


def _round_up(x, m):
    return ((x + m - 1) // m) * m


def _pick_tile_hw(hw, c, budget_bytes=12 << 20):
    """Largest multiple-of-128 spatial tile whose double-buffered working set
    (xf/xr/fin/out2 (C, T) f32 streams + K13/K9 (250, T) blocks, x2 buffers)
    stays within `budget_bytes` (leaves headroom on v7x's 64 MiB VMEM)."""
    per_col = (4 * 2 * c + 2 * (169 + 81)) * 4
    t = max(128, (budget_bytes // per_col) // 128 * 128)
    t = min(t, 2048)
    return min(t, _round_up(hw, 128))


def block2_fused_pallas(k13, k9, xf, xr, c0f, c1f, c0r, c1r,
                        wf2, bf, wr2, br, w1, b1):
    """k13/k9: (169, HW)/(81, HW); xf/xr: (N, C, HW); c*: (N, C, 169/81)."""
    N, C, HW = xf.shape
    tile = _pick_tile_hw(HW, C)
    HW_pad = _round_up(HW, tile)
    if HW_pad != HW:
        spad = ((0, 0), (0, 0), (0, HW_pad - HW))
        xf = jnp.pad(xf, spad)
        xr = jnp.pad(xr, spad)
        kpad = ((0, 0), (0, HW_pad - HW))
        k13 = jnp.pad(k13, kpad)
        k9 = jnp.pad(k9, kpad)

    # hb outer, n inner: the K13/K9 block index is constant across the batch
    # loop, so the interpolation operators are only re-fetched per hb block.
    grid = (HW_pad // tile, N)

    def stream_spec():
        return pl.BlockSpec((1, C, tile), lambda hb, n: (n, 0, hb))

    in_specs = [
        pl.BlockSpec((169, tile), lambda hb, n: (0, hb)),    # K13
        pl.BlockSpec((81, tile), lambda hb, n: (0, hb)),     # K9
        stream_spec(),                                       # fea
        stream_spec(),                                       # feart
        pl.BlockSpec((1, C, 169), lambda hb, n: (n, 0, 0)),  # c0f
        pl.BlockSpec((1, C, 81), lambda hb, n: (n, 0, 0)),   # c1f
        pl.BlockSpec((1, C, 169), lambda hb, n: (n, 0, 0)),  # c0r
        pl.BlockSpec((1, C, 81), lambda hb, n: (n, 0, 0)),   # c1r
        pl.BlockSpec((C, C), lambda hb, n: (0, 0)),          # wf2
        pl.BlockSpec((C, 1), lambda hb, n: (0, 0)),          # bf
        pl.BlockSpec((C, C), lambda hb, n: (0, 0)),          # wr2
        pl.BlockSpec((C, 1), lambda hb, n: (0, 0)),          # br
        pl.BlockSpec((C, C), lambda hb, n: (0, 0)),          # w1
        pl.BlockSpec((C, 1), lambda hb, n: (0, 0)),          # b1
    ]
    out_specs = (stream_spec(), stream_spec())

    fin, out2 = pl.pallas_call(
        _block2_fused_kernel,
        out_shape=(jax.ShapeDtypeStruct((N, C, HW_pad), jnp.float32),
                   jax.ShapeDtypeStruct((N, C, HW_pad), jnp.float32)),
        grid_spec=pltpu.PrefetchScalarGridSpec(
            num_scalar_prefetch=0,
            grid=grid,
            in_specs=in_specs,
            out_specs=out_specs),
        compiler_params=pltpu.CompilerParams(
            dimension_semantics=("parallel", "parallel"),
            vmem_limit_bytes=48 * 1024 * 1024),
    )(k13, k9, xf, xr, c0f, c1f, c0r, c1r, wf2, bf, wr2, br, w1, b1)
    return fin[:, :, :HW], out2[:, :, :HW]


# --------------------------- plain-JAX glue ----------------------------------
def adaptive_max_pool2d(x, out_size):
    """PyTorch nn.AdaptiveMaxPool2d semantics; vectorized (gather + max per axis)."""
    def pool_axis(a, axis):
        in_size = a.shape[axis]
        o = np.arange(out_size)
        starts = (o * in_size) // out_size
        ends = -((-(o + 1) * in_size) // out_size)
        max_len = int((ends - starts).max())
        idx = starts[:, None] + np.arange(max_len)[None, :]
        idx = np.minimum(idx, ends[:, None] - 1).astype(np.int32)  # clamp; repeats are harmless for max
        g = jnp.take(a, jnp.asarray(idx.reshape(-1)), axis=axis)
        new_shape = a.shape[:axis] + (out_size, max_len) + a.shape[axis + 1:]
        return jnp.max(g.reshape(new_shape), axis=axis + 1)

    return pool_axis(pool_axis(x, 2), 3)


def bilinear_matrix(out_size, in_size):
    """Interpolation matrix matching F.interpolate(mode='bilinear', align_corners=True)."""
    M = np.zeros((out_size, in_size), dtype=np.float32)
    scale = 0.0 if out_size == 1 else (in_size - 1) / (out_size - 1)
    for i in range(out_size):
        src = i * scale
        f = min(int(math.floor(src)), in_size - 1)
        frac = src - f
        M[i, f] += 1.0 - frac
        if frac > 0.0:
            M[i, min(f + 1, in_size - 1)] += frac
    return M


def kron_interp_matrix(H, W, s):
    """(s*s, H*W) operator mapping flat small (i*s+j) -> flat upsampled (h*W+w)."""
    Mh = bilinear_matrix(H, s)           # (H, s)
    Mw = bilinear_matrix(W, s)           # (W, s)
    return jnp.asarray(np.kron(Mh.T, Mw.T))   # [(i*s+j),(h*W+w)] = Mh[h,i]*Mw[w,j]


def block2_forward(fea, feart, params):
    N, C, H, W = fea.shape
    HW = H * W
    eps = 1e-5

    def apl_small(x, prefix):
        """Pooled branches of one APL with the branch slice of the BN-folded fus
        conv weight pre-applied -> tiny (N, C, 169)/(N, C, 81) tensors."""
        scale = params[prefix + '_bn_gamma'] / jnp.sqrt(params[prefix + '_bn_var'] + eps)
        shift = params[prefix + '_bn_beta'] - params[prefix + '_bn_mean'] * scale
        w_fus = params[prefix + '_fus_w'] * scale[:, None]        # (C, 3C), BN scale folded
        bias = params[prefix + '_fus_b'] * scale + shift          # (C,),   BN folded

        def branch(pool_size, w_branch, w_fus_slice):
            p = adaptive_max_pool2d(x, pool_size)                  # (N, C, s, s)
            y = jnp.maximum(jnp.einsum('oc,ncij->noij', w_branch, p), 0.0)
            y = jnp.einsum('oc,ncij->noij', w_fus_slice, y)        # channel mix commutes with upsample
            return y.reshape(N, C, pool_size * pool_size)

        c0 = branch(13, params[prefix + '_b0_w'], w_fus[:, :C])
        c1 = branch(9, params[prefix + '_b1_w'], w_fus[:, C:2 * C])
        return c0, c1, w_fus[:, 2 * C:], bias.reshape(C, 1)

    c0f, c1f, wf2, bf = apl_small(fea, 'f')
    c0r, c1r, wr2, br = apl_small(feart, 'r')

    k13 = kron_interp_matrix(H, W, 13)
    k9 = kron_interp_matrix(H, W, 9)

    fin, out2 = block2_fused_pallas(
        k13, k9, fea.reshape(N, C, HW), feart.reshape(N, C, HW),
        c0f, c1f, c0r, c1r, wf2, bf, wr2, br,
        params['conv1_w'], params['conv1_b'].reshape(C, 1))

    return fin.reshape(N, C, H, W), out2.reshape(N, C, H, W)


# --------------------------- pure-JAX reference ------------------------------
def block2_reference(fea, feart, params):
    """Straightforward port of the PyTorch module (inference-mode BN)."""
    N, C, H, W = fea.shape
    eps = 1e-5

    def upsample(y):
        s = y.shape[-1]
        Mh = jnp.asarray(bilinear_matrix(H, s))
        Mw = jnp.asarray(bilinear_matrix(W, s))
        return jnp.einsum('Hi,ncij,Wj->ncHW', Mh, y, Mw)

    def apl(x, prefix):
        b0 = adaptive_max_pool2d(x, 13)
        b0 = upsample(jnp.maximum(jnp.einsum('oc,ncij->noij', params[prefix + '_b0_w'], b0), 0.0))
        b1 = adaptive_max_pool2d(x, 9)
        b1 = upsample(jnp.maximum(jnp.einsum('oc,ncij->noij', params[prefix + '_b1_w'], b1), 0.0))
        cat = jnp.concatenate([b0, b1, x], axis=1)
        y = jnp.einsum('oc,nchw->nohw', params[prefix + '_fus_w'], cat) \
            + params[prefix + '_fus_b'][None, :, None, None]
        scale = params[prefix + '_bn_gamma'] / jnp.sqrt(params[prefix + '_bn_var'] + eps)
        shift = params[prefix + '_bn_beta'] - params[prefix + '_bn_mean'] * scale
        return jnp.maximum(y * scale[None, :, None, None] + shift[None, :, None, None], 0.0)

    infea = apl(fea, 'f')
    infeart = apl(feart, 'r')

    def conv1(a):
        return jnp.einsum('oc,nchw->nohw', params['conv1_w'], a) \
            + params['conv1_b'][None, :, None, None]

    diff = infeart - infea
    new_sinrt = diff * jax.nn.sigmoid(conv1(diff))
    return conv1(infeart + new_sinrt), conv1(new_sinrt)


# --------------------------- deterministic params ----------------------------
def init_params(key, C):
    keys = jax.random.split(key, 12)

    def w(k, shape, fan_in):
        bound = 1.0 / math.sqrt(fan_in)
        return jax.random.uniform(k, shape, jnp.float32, -bound, bound)

    p = {}
    # mpltf (APL for fea)
    p['f_b0_w'] = w(keys[0], (C, C), C)
    p['f_b1_w'] = w(keys[1], (C, C), C)
    p['f_fus_w'] = w(keys[2], (C, 3 * C), 3 * C)
    p['f_fus_b'] = w(keys[3], (C,), 3 * C)
    p['f_bn_gamma'] = jnp.ones((C,), jnp.float32)
    p['f_bn_beta'] = jnp.zeros((C,), jnp.float32)
    p['f_bn_mean'] = jnp.zeros((C,), jnp.float32)
    p['f_bn_var'] = jnp.ones((C,), jnp.float32)
    # mpltrt (APL for feart)
    p['r_b0_w'] = w(keys[4], (C, C), C)
    p['r_b1_w'] = w(keys[5], (C, C), C)
    p['r_fus_w'] = w(keys[6], (C, 3 * C), 3 * C)
    p['r_fus_b'] = w(keys[7], (C,), 3 * C)
    p['r_bn_gamma'] = jnp.ones((C,), jnp.float32)
    p['r_bn_beta'] = jnp.zeros((C,), jnp.float32)
    p['r_bn_mean'] = jnp.zeros((C,), jnp.float32)
    p['r_bn_var'] = jnp.ones((C,), jnp.float32)
    # shared conv1
    p['conv1_w'] = w(keys[8], (C, C), C)
    p['conv1_b'] = w(keys[9], (C,), C)
    return p


if __name__ == "__main__":
    key = jax.random.PRNGKey(0)
    k_fea, k_feart, k_param = jax.random.split(key, 3)
    N, C, H, W = 2, 4, 16, 16
    fea = jax.random.normal(k_fea, (N, C, H, W), jnp.float32)
    feart = jax.random.normal(k_feart, (N, C, H, W), jnp.float32)
    params = init_params(k_param, C)

    fwd = jax.jit(lambda a, b: block2_forward(a, b, params))
    fin, gated = fwd(fea, feart)
    jax.block_until_ready((fin, gated))

    ref_fin, ref_gated = jax.jit(lambda a, b: block2_reference(a, b, params))(fea, feart)
    np.testing.assert_allclose(np.asarray(fin), np.asarray(ref_fin), rtol=2e-3, atol=2e-3)
    np.testing.assert_allclose(np.asarray(gated), np.asarray(ref_gated), rtol=2e-3, atol=2e-3)

    assert fin.shape == (N, C, H, W) and gated.shape == (N, C, H, W)
    assert fin.dtype == jnp.float32 and gated.dtype == jnp.float32
    print("KERNEL_OK")
</pallas_src>

<mosaic_0001>
module attributes {stable_mosaic.version = 11 : i64} {
  func.func @_block2_fused_kernel(%arg0: i32, %arg1: i32, %arg2: memref<169x256xf32, #tpu.memory_space<vmem>>, %arg3: memref<81x256xf32, #tpu.memory_space<vmem>>, %arg4: memref<1x4x256xf32, #tpu.memory_space<vmem>>, %arg5: memref<1x4x256xf32, #tpu.memory_space<vmem>>, %arg6: memref<1x4x169xf32, #tpu.memory_space<vmem>>, %arg7: memref<1x4x81xf32, #tpu.memory_space<vmem>>, %arg8: memref<1x4x169xf32, #tpu.memory_space<vmem>>, %arg9: memref<1x4x81xf32, #tpu.memory_space<vmem>>, %arg10: memref<4x4xf32, #tpu.memory_space<vmem>>, %arg11: memref<4x1xf32, #tpu.memory_space<vmem>>, %arg12: memref<4x4xf32, #tpu.memory_space<vmem>>, %arg13: memref<4x1xf32, #tpu.memory_space<vmem>>, %arg14: memref<4x4xf32, #tpu.memory_space<vmem>>, %arg15: memref<4x1xf32, #tpu.memory_space<vmem>>, %arg16: memref<1x4x256xf32, #tpu.memory_space<vmem>>, %arg17: memref<1x4x256xf32, #tpu.memory_space<vmem>>) attributes {dimension_semantics = [#tpu.dimension_semantics<parallel>, #tpu.dimension_semantics<parallel>], iteration_bounds = array<i64: 1, 2>, scalar_prefetch = 0 : i64, scratch_operands = 0 : i64, tpu.core_type = #tpu.core_type<tc>, window_params = [{transform_indices = @transform_0, window_bounds = array<i64: 169, 256>}, {transform_indices = @transform_1, window_bounds = array<i64: 81, 256>}, {transform_indices = @transform_2, window_bounds = array<i64: 1, 4, 256>}, {transform_indices = @transform_3, window_bounds = array<i64: 1, 4, 256>}, {transform_indices = @transform_4, window_bounds = array<i64: 1, 4, 169>}, {transform_indices = @transform_5, window_bounds = array<i64: 1, 4, 81>}, {transform_indices = @transform_6, window_bounds = array<i64: 1, 4, 169>}, {transform_indices = @transform_7, window_bounds = array<i64: 1, 4, 81>}, {pipeline_mode = #tpu.pipeline_mode<synchronous>, transform_indices = @transform_8, window_bounds = array<i64: 4, 4>}, {pipeline_mode = #tpu.pipeline_mode<synchronous>, transform_indices = @transform_9, window_bounds = array<i64: 4, 1>}, {pipeline_mode = #tpu.pipeline_mode<synchronous>, transform_indices = @transform_10, window_bounds = array<i64: 4, 4>}, {pipeline_mode = #tpu.pipeline_mode<synchronous>, transform_indices = @transform_11, window_bounds = array<i64: 4, 1>}, {pipeline_mode = #tpu.pipeline_mode<synchronous>, transform_indices = @transform_12, window_bounds = array<i64: 4, 4>}, {pipeline_mode = #tpu.pipeline_mode<synchronous>, transform_indices = @transform_13, window_bounds = array<i64: 4, 1>}, {transform_indices = @transform_14, window_bounds = array<i64: 1, 4, 256>}, {transform_indices = @transform_15, window_bounds = array<i64: 1, 4, 256>}]} {
    %c0 = arith.constant 0 : index
    %c0_0 = arith.constant 0 : index
    %0 = vector.load %arg2[%c0, %c0_0] : memref<169x256xf32, #tpu.memory_space<vmem>>, vector<169x256xf32>
    %c0_1 = arith.constant 0 : index
    %c0_2 = arith.constant 0 : index
    %1 = vector.load %arg3[%c0_1, %c0_2] : memref<81x256xf32, #tpu.memory_space<vmem>>, vector<81x256xf32>
    %c0_3 = arith.constant 0 : index
    %c0_4 = arith.constant 0 : index
    %c0_5 = arith.constant 0 : index
    %2 = vector.load %arg6[%c0_3, %c0_4, %c0_5] : memref<1x4x169xf32, #tpu.memory_space<vmem>>, vector<1x4x169xf32>
    %3 = vector.shape_cast %2 : vector<1x4x169xf32> to vector<4x169xf32>
    %cst = arith.constant dense<0.000000e+00> : vector<4x256xf32>
    %4 = tpu.matmul %3, %0, %cst {dimension_numbers = #tpu.dot_dimension_numbers<[1], [0], [0], [1], [0, 0, 1, 1], [], []>} : vector<4x169xf32>, vector<169x256xf32>, vector<4x256xf32> -> vector<4x256xf32>
    %c0_6 = arith.constant 0 : index
    %c0_7 = arith.constant 0 : index
    %c0_8 = arith.constant 0 : index
    %5 = vector.load %arg7[%c0_6, %c0_7, %c0_8] : memref<1x4x81xf32, #tpu.memory_space<vmem>>, vector<1x4x81xf32>
    %6 = vector.shape_cast %5 : vector<1x4x81xf32> to vector<4x81xf32>
    %cst_9 = arith.constant dense<0.000000e+00> : vector<4x256xf32>
    %7 = tpu.matmul %6, %1, %cst_9 {dimension_numbers = #tpu.dot_dimension_numbers<[1], [0], [0], [1], [0, 0, 1, 1], [], []>} : vector<4x81xf32>, vector<81x256xf32>, vector<4x256xf32> -> vector<4x256xf32>
    %8 = arith.addf %4, %7 : vector<4x256xf32>
    %c0_10 = arith.constant 0 : index
    %c0_11 = arith.constant 0 : index
    %9 = vector.load %arg10[%c0_10, %c0_11] : memref<4x4xf32, #tpu.memory_space<vmem>>, vector<4x4xf32>
    %c0_12 = arith.constant 0 : index
    %c0_13 = arith.constant 0 : index
    %c0_14 = arith.constant 0 : index
    %10 = vector.load %arg4[%c0_12, %c0_13, %c0_14] : memref<1x4x256xf32, #tpu.memory_space<vmem>>, vector<1x4x256xf32>
    %11 = vector.shape_cast %10 : vector<1x4x256xf32> to vector<4x256xf32>
    %cst_15 = arith.constant dense<0.000000e+00> : vector<4x256xf32>
    %12 = tpu.matmul %9, %11, %cst_15 {dimension_numbers = #tpu.dot_dimension_numbers<[1], [0], [0], [1], [0, 0, 1, 1], [], []>} : vector<4x4xf32>, vector<4x256xf32>, vector<4x256xf32> -> vector<4x256xf32>
    %13 = arith.addf %8, %12 : vector<4x256xf32>
    %c0_16 = arith.constant 0 : index
    %c0_17 = arith.constant 0 : index
    %14 = vector.load %arg11[%c0_16, %c0_17] : memref<4x1xf32, #tpu.memory_space<vmem>>, vector<4x1xf32>
    %15 = vector.broadcast %14 : vector<4x1xf32> to vector<4x256xf32>
    %16 = arith.addf %13, %15 : vector<4x256xf32>
    %cst_18 = arith.constant 0.000000e+00 : f32
    %17 = vector.broadcast %cst_18 : f32 to vector<4x256xf32>
    %18 = arith.maximumf %16, %17 : vector<4x256xf32>
    %c0_19 = arith.constant 0 : index
    %c0_20 = arith.constant 0 : index
    %c0_21 = arith.constant 0 : index
    %19 = vector.load %arg8[%c0_19, %c0_20, %c0_21] : memref<1x4x169xf32, #tpu.memory_space<vmem>>, vector<1x4x169xf32>
    %20 = vector.shape_cast %19 : vector<1x4x169xf32> to vector<4x169xf32>
    %cst_22 = arith.constant dense<0.000000e+00> : vector<4x256xf32>
    %21 = tpu.matmul %20, %0, %cst_22 {dimension_numbers = #tpu.dot_dimension_numbers<[1], [0], [0], [1], [0, 0, 1, 1], [], []>} : vector<4x169xf32>, vector<169x256xf32>, vector<4x256xf32> -> vector<4x256xf32>
    %c0_23 = arith.constant 0 : index
    %c0_24 = arith.constant 0 : index
    %c0_25 = arith.constant 0 : index
    %22 = vector.load %arg9[%c0_23, %c0_24, %c0_25] : memref<1x4x81xf32, #tpu.memory_space<vmem>>, vector<1x4x81xf32>
    %23 = vector.shape_cast %22 : vector<1x4x81xf32> to vector<4x81xf32>
    %cst_26 = arith.constant dense<0.000000e+00> : vector<4x256xf32>
    %24 = tpu.matmul %23, %1, %cst_26 {dimension_numbers = #tpu.dot_dimension_numbers<[1], [0], [0], [1], [0, 0, 1, 1], [], []>} : vector<4x81xf32>, vector<81x256xf32>, vector<4x256xf32> -> vector<4x256xf32>
    %25 = arith.addf %21, %24 : vector<4x256xf32>
    %c0_27 = arith.constant 0 : index
    %c0_28 = arith.constant 0 : index
    %26 = vector.load %arg12[%c0_27, %c0_28] : memref<4x4xf32, #tpu.memory_space<vmem>>, vector<4x4xf32>
    %c0_29 = arith.constant 0 : index
    %c0_30 = arith.constant 0 : index
    %c0_31 = arith.constant 0 : index
    %27 = vector.load %arg5[%c0_29, %c0_30, %c0_31] : memref<1x4x256xf32, #tpu.memory_space<vmem>>, vector<1x4x256xf32>
    %28 = vector.shape_cast %27 : vector<1x4x256xf32> to vector<4x256xf32>
    %cst_32 = arith.constant dense<0.000000e+00> : vector<4x256xf32>
    %29 = tpu.matmul %26, %28, %cst_32 {dimension_numbers = #tpu.dot_dimension_numbers<[1], [0], [0], [1], [0, 0, 1, 1], [], []>} : vector<4x4xf32>, vector<4x256xf32>, vector<4x256xf32> -> vector<4x256xf32>
    %30 = arith.addf %25, %29 : vector<4x256xf32>
    %c0_33 = arith.constant 0 : index
    %c0_34 = arith.constant 0 : index
    %31 = vector.load %arg13[%c0_33, %c0_34] : memref<4x1xf32, #tpu.memory_space<vmem>>, vector<4x1xf32>
    %32 = vector.broadcast %31 : vector<4x1xf32> to vector<4x256xf32>
    %33 = arith.addf %30, %32 : vector<4x256xf32>
    %cst_35 = arith.constant 0.000000e+00 : f32
    %34 = vector.broadcast %cst_35 : f32 to vector<4x256xf32>
    %35 = arith.maximumf %33, %34 : vector<4x256xf32>
    %c0_36 = arith.constant 0 : index
    %c0_37 = arith.constant 0 : index
    %36 = vector.load %arg14[%c0_36, %c0_37] : memref<4x4xf32, #tpu.memory_space<vmem>>, vector<4x4xf32>
    %c0_38 = arith.constant 0 : index
    %c0_39 = arith.constant 0 : index
    %37 = vector.load %arg15[%c0_38, %c0_39] : memref<4x1xf32, #tpu.memory_space<vmem>>, vector<4x1xf32>
    %cst_40 = arith.constant dense<0.000000e+00> : vector<4x256xf32>
    %38 = tpu.matmul %36, %35, %cst_40 {dimension_numbers = #tpu.dot_dimension_numbers<[1], [0], [0], [1], [0, 0, 1, 1], [], []>} : vector<4x4xf32>, vector<4x256xf32>, vector<4x256xf32> -> vector<4x256xf32>
    %cst_41 = arith.constant dense<0.000000e+00> : vector<4x256xf32>
    %39 = tpu.matmul %36, %18, %cst_41 {dimension_numbers = #tpu.dot_dimension_numbers<[1], [0], [0], [1], [0, 0, 1, 1], [], []>} : vector<4x4xf32>, vector<4x256xf32>, vector<4x256xf32> -> vector<4x256xf32>
    %40 = arith.subf %38, %39 : vector<4x256xf32>
    %41 = vector.broadcast %37 : vector<4x1xf32> to vector<4x256xf32>
    %42 = arith.addf %40, %41 : vector<4x256xf32>
    %43 = arith.negf %42 : vector<4x256xf32>
    %44 = math.exp %43 : vector<4x256xf32>
    %cst_42 = arith.constant 1.000000e+00 : f32
    %45 = vector.broadcast %cst_42 : f32 to vector<4x256xf32>
    %46 = arith.addf %45, %44 : vector<4x256xf32>
    %47 = arith.divf %45, %46 : vector<4x256xf32>
    %48 = arith.subf %35, %18 : vector<4x256xf32>
    %49 = arith.mulf %48, %47 : vector<4x256xf32>
    %cst_43 = arith.constant dense<0.000000e+00> : vector<4x256xf32>
    %50 = tpu.matmul %36, %49, %cst_43 {dimension_numbers = #tpu.dot_dimension_numbers<[1], [0], [0], [1], [0, 0, 1, 1], [], []>} : vector<4x4xf32>, vector<4x256xf32>, vector<4x256xf32> -> vector<4x256xf32>
    %51 = vector.broadcast %37 : vector<4x1xf32> to vector<4x256xf32>
    %52 = arith.addf %50, %51 : vector<4x256xf32>
    %c0_44 = arith.constant 0 : index
    %c0_45 = arith.constant 0 : index
    %c0_46 = arith.constant 0 : index
    %53 = vector.load %arg17[%c0_44, %c0_45, %c0_46] : memref<1x4x256xf32, #tpu.memory_space<vmem>>, vector<1x4x256xf32>
    %54 = vector.shape_cast %53 : vector<1x4x256xf32> to vector<4x256xf32>
    %55 = vector.shape_cast %52 : vector<4x256xf32> to vector<1x4x256xf32>
    tpu.vector_store %arg17[%c0_44, %c0_45, %c0_46], %55 {strides = array<i32>} : memref<1x4x256xf32, #tpu.memory_space<vmem>>, vector<1x4x256xf32>,
    %56 = arith.addf %38, %50 : vector<4x256xf32>
    %57 = vector.broadcast %37 : vector<4x1xf32> to vector<4x256xf32>
    %58 = arith.addf %56, %57 : vector<4x256xf32>
    %c0_47 = arith.constant 0 : index
    %c0_48 = arith.constant 0 : index
    %c0_49 = arith.constant 0 : index
    %59 = vector.load %arg16[%c0_47, %c0_48, %c0_49] : memref<1x4x256xf32, #tpu.memory_space<vmem>>, vector<1x4x256xf32>
    %60 = vector.shape_cast %59 : vector<1x4x256xf32> to vector<4x256xf32>
    %61 = vector.shape_cast %58 : vector<4x256xf32> to vector<1x4x256xf32>
    tpu.vector_store %arg16[%c0_47, %c0_48, %c0_49], %61 {strides = array<i32>} : memref<1x4x256xf32, #tpu.memory_space<vmem>>, vector<1x4x256xf32>,
    return
  }
  func.func @transform_0(%arg0: i32, %arg1: i32) -> (i32, i32) {
    %c0_i32 = arith.constant 0 : i32
    %c0_i32_0 = arith.constant 0 : i32
    return %c0_i32, %arg0 : i32, i32
  }
  func.func @transform_1(%arg0: i32, %arg1: i32) -> (i32, i32) {
    %c0_i32 = arith.constant 0 : i32
    %c0_i32_0 = arith.constant 0 : i32
    return %c0_i32, %arg0 : i32, i32
  }
  func.func @transform_2(%arg0: i32, %arg1: i32) -> (i32, i32, i32) {
    %c0_i32 = arith.constant 0 : i32
    %c0_i32_0 = arith.constant 0 : i32
    return %arg1, %c0_i32, %arg0 : i32, i32, i32
  }
  func.func @transform_3(%arg0: i32, %arg1: i32) -> (i32, i32, i32) {
    %c0_i32 = arith.constant 0 : i32
    %c0_i32_0 = arith.constant 0 : i32
    return %arg1, %c0_i32, %arg0 : i32, i32, i32
  }
  func.func @transform_4(%arg0: i32, %arg1: i32) -> (i32, i32, i32) {
    %c0_i32 = arith.constant 0 : i32
    %c0_i32_0 = arith.constant 0 : i32
    %c0_i32_1 = arith.constant 0 : i32
    return %arg1, %c0_i32, %c0_i32_0 : i32, i32, i32
  }
  func.func @transform_5(%arg0: i32, %arg1: i32) -> (i32, i32, i32) {
    %c0_i32 = arith.constant 0 : i32
    %c0_i32_0 = arith.constant 0 : i32
    %c0_i32_1 = arith.constant 0 : i32
    return %arg1, %c0_i32, %c0_i32_0 : i32, i32, i32
  }
  func.func @transform_6(%arg0: i32, %arg1: i32) -> (i32, i32, i32) {
    %c0_i32 = arith.constant 0 : i32
    %c0_i32_0 = arith.constant 0 : i32
    %c0_i32_1 = arith.constant 0 : i32
    return %arg1, %c0_i32, %c0_i32_0 : i32, i32, i32
  }
  func.func @transform_7(%arg0: i32, %arg1: i32) -> (i32, i32, i32) {
    %c0_i32 = arith.constant 0 : i32
    %c0_i32_0 = arith.constant 0 : i32
    %c0_i32_1 = arith.constant 0 : i32
    return %arg1, %c0_i32, %c0_i32_0 : i32, i32, i32
  }
  func.func @transform_8(%arg0: i32, %arg1: i32) -> (i32, i32) {
    %c0_i32 = arith.constant 0 : i32
    %c0_i32_0 = arith.constant 0 : i32
    %c0_i32_1 = arith.constant 0 : i32
    return %c0_i32, %c0_i32_0 : i32, i32
  }
  func.func @transform_9(%arg0: i32, %arg1: i32) -> (i32, i32) {
    %c0_i32 = arith.constant 0 : i32
    %c0_i32_0 = arith.constant 0 : i32
    %c0_i32_1 = arith.constant 0 : i32
    return %c0_i32, %c0_i32_0 : i32, i32
  }
  func.func @transform_10(%arg0: i32, %arg1: i32) -> (i32, i32) {
    %c0_i32 = arith.constant 0 : i32
    %c0_i32_0 = arith.constant 0 : i32
    %c0_i32_1 = arith.constant 0 : i32
    return %c0_i32, %c0_i32_0 : i32, i32
  }
  func.func @transform_11(%arg0: i32, %arg1: i32) -> (i32, i32) {
    %c0_i32 = arith.constant 0 : i32
    %c0_i32_0 = arith.constant 0 : i32
    %c0_i32_1 = arith.constant 0 : i32
    return %c0_i32, %c0_i32_0 : i32, i32
  }
  func.func @transform_12(%arg0: i32, %arg1: i32) -> (i32, i32) {
    %c0_i32 = arith.constant 0 : i32
    %c0_i32_0 = arith.constant 0 : i32
    %c0_i32_1 = arith.constant 0 : i32
    return %c0_i32, %c0_i32_0 : i32, i32
  }
  func.func @transform_13(%arg0: i32, %arg1: i32) -> (i32, i32) {
    %c0_i32 = arith.constant 0 : i32
    %c0_i32_0 = arith.constant 0 : i32
    %c0_i32_1 = arith.constant 0 : i32
    return %c0_i32, %c0_i32_0 : i32, i32
  }
  func.func @transform_14(%arg0: i32, %arg1: i32) -> (i32, i32, i32) {
    %c0_i32 = arith.constant 0 : i32
    %c0_i32_0 = arith.constant 0 : i32
    return %arg1, %c0_i32, %arg0 : i32, i32, i32
  }
  func.func @transform_15(%arg0: i32, %arg1: i32) -> (i32, i32, i32) {
    %c0_i32 = arith.constant 0 : i32
    %c0_i32_0 = arith.constant 0 : i32
    return %arg1, %c0_i32, %arg0 : i32, i32, i32
  }
}

</mosaic_0001>

<bundles_post_ra>
// kernel: _lambda_.1
= control target key start
LH: loop header
LB: loop body
LE: loop exit
PB: predicated region body
PF: predicated region fallthrough
CT: control target
= control target key end

     0   :  { %s2141_s18 = smov 0   ;;  %s2143_s19 = smov 0   ;;  %s2477_s0 = inlined_call_operand.vmem [shape: f32[169,256], index: 0, kind: input, shape index: {}]   ;;  %s2478_s1 = inlined_call_operand.vmem [shape: f32[81,256], index: 1, kind: input, shape index: {}]   ;;  %s2479_s2 = inlined_call_operand.vmem [shape: f32[2,4,256], index: 2, kind: input, shape index: {}]   ;;  %s2480_s3 = inlined_call_operand.vmem [shape: f32[2,4,256], index: 3, kind: input, shape index: {}]   ;;  %s2481_s4 = inlined_call_operand.vmem [shape: f32[2,4,169], index: 4, kind: input, shape index: {}]   ;;  %s2482_s5 = inlined_call_operand.vmem [shape: f32[2,4,81], index: 5, kind: input, shape index: {}]   ;;  %s2483_s6 = inlined_call_operand.vmem [shape: f32[2,4,169], index: 6, kind: input, shape index: {}]   ;;  %s2484_s7 = inlined_call_operand.vmem [shape: f32[2,4,81], index: 7, kind: input, shape index: {}]   ;;  %s2485_s8 = inlined_call_operand.vmem [shape: f32[4,4], index: 8, kind: input, shape index: {}]   ;;  %s2486_s9 = inlined_call_operand.vmem [shape: f32[4,1], index: 9, kind: input, shape index: {}]   ;;  %s2487_s10 = inlined_call_operand.vmem [shape: f32[4,4], index: 10, kind: input, shape index: {}]   ;;  %s2488_s11 = inlined_call_operand.vmem [shape: f32[4,1], index: 11, kind: input, shape index: {}]   ;;  %s2489_s12 = inlined_call_operand.vmem [shape: f32[4,4], index: 12, kind: input, shape index: {}]   ;;  %s2490_s13 = inlined_call_operand.vmem [shape: f32[4,1], index: 13, kind: input, shape index: {}]   ;;  %s2491_s14 = inlined_call_operand.vmem [shape: f32[2,4,256], index: 14, kind: output, shape index: {0}]   ;;  %s2492_s15 = inlined_call_operand.vmem [shape: f32[2,4,256], index: 15, kind: output, shape index: {1}]  }
   0x1   :  { %2494 = sst [smem:[#allocation3_spill]] %s2479_s2  ;;  %s2145_s20 = smov 0  }
   0x2 LB: > { %s35_s21 = sadd.s32 1, %s2052_s19  ;;  %p1801_p0 = scmp.ge.s32.totalorder %s2056_s20, 1  ;;  %s2056_s20 = sphi %s2145_s20, %s26_s20   ;;  %s2052_s19 = sphi %s2143_s19, %s2502_s19   ;;  %s2048_s18 = sphi %s2141_s18, %s2501_s18  }
   0x3   : > { %p36_p1 = scmp.ge.s32.totalorder %s35_s21, 2  ;;  %p540_p2 = scmp.lt.s32.totalorder %s2056_s20, 3 }
   0x5   : > { %s2504_s21 = smov (%p36_p1, %s35_s21), 0  ;;  %p541_p3 = pnand %p1801_p0, %p540_p2 }
   0x6   : > { %2495 = sst [smem:[#allocation2_spill]] %s2504_s21  ;;  %v757_v0 = vld [vmem:[%s2478_s1 + $0x8] sm:$0xff] (!%p541_p3)  ;;  %v759_v1 = vld [vmem:[%s2478_s1 + $0x18] sm:$0xff] (!%p541_p3)  ;;  %v756_v2 = vld [vmem:[%s2478_s1] sm:$0xff] (!%p541_p3)  ;;  %p655_p4 = scmp.lt.s32.totalorder (!%p541_p3), %s2048_s18, 1  ;;  %v2058_v7 = vmov (!%p541_p3), 0.0  }
   0x7   : > { %544 = sbr.rel (%p541_p3) target bundleno = 782 (0x30e), region = 76  ;;  %v1853_v3 = vpack.c.bf16 (!%p541_p3), %v759_v1, %v757_v0  ;;  %v758_v4 = vld [vmem:[%s2478_s1 + $0x10] sm:$0xff] (!%p541_p3)  ;;  %v761_v5 = vld [vmem:[%s2478_s1 + $0x28] sm:$0xff] (!%p541_p3)  ;;  %v763_v6 = vld [vmem:[%s2478_s1 + $0x38] sm:$0xff] (!%p541_p3)  ;;  %1021 = vmatprep.mubr.f32.mxu1 (!%p541_p3), %v2058_v7  ;;  %855 = vmatprep.mubr.f32.mxu0 (!%p541_p3), %v2058_v7  ;;  %v2059_v15 = vmov (!%p541_p3), 0   ;;  %s2496_s2 = sld [smem:[#allocation3_spill]] (!%p541_p3) }
   0x8   : > { %v1855_v8 = vpack.c.bf16 (!%p541_p3), %v758_v4, %v756_v2  ;;  %v1857_v9 = vpack.c.bf16 (!%p541_p3), %v763_v6, %v761_v5  ;;  %v760_v10 = vld [vmem:[%s2478_s1 + $0x20] sm:$0xff] (!%p541_p3)  ;;  %v762_v11 = vld [vmem:[%s2478_s1 + $0x30] sm:$0xff] (!%p541_p3)  ;;  %v765_v12 = vld [vmem:[%s2478_s1 + $0x48] sm:$0xff] (!%p541_p3)  ;;  %2020 = vset.pattern.permute.xlu0 (!%p541_p3), %v2059_v15  ;;  %2021 = vset.pattern.permute.xlu1 (!%p541_p3), %v2059_v15  ;;  %vm952_vm0 = vcmask (!%p541_p3), 1043456   ;;  %vm948_vm1 = vcmask (!%p541_p3), 31744  }
   0x9   : > { %1854 = vmatprep.subr.bf16.mxu0 (!%p541_p3), %v1853_v3  ;;  %v767_v13 = vld [vmem:[%s2478_s1 + $0x58] sm:$0xff] (!%p541_p3)  ;;  %v1859_v14 = vpack.c.bf16 (!%p541_p3), %v762_v11, %v760_v10  ;;  %v764_v17 = vld [vmem:[%s2478_s1 + $0x40] sm:$0xff] (!%p541_p3)  ;;  %v766_v18 = vld [vmem:[%s2478_s1 + $0x50] sm:$0xff] (!%p541_p3)  ;;  %vm784_vm2 = vcmask (!%p541_p3), 1040384   ;;  %vm780_vm3 = vcmask (!%p541_p3), 662528   ;;  %vm864_vm4 = vcmask (!%p541_p3), 334848  }
   0xa   : > { %1856 = vmatpush1.bf16.msra.mxu0 (!%p541_p3), %v1855_v8  ;;  %v1861_v16 = vpack.c.bf16 (!%p541_p3), %v767_v13, %v765_v12  ;;  %v769_v20 = vld [vmem:[%s2478_s1 + $0x68] sm:$0xff] (!%p541_p3)  ;;  %v771_v21 = vld [vmem:[%s2478_s1 + $0x78] sm:$0xff] (!%p541_p3)  ;;  %v944_v23 = vld [vmem:[%s2485_s8] sm:$0xf] (!%p541_p3)  ;;  %v1863_v24 = vpack.c.bf16 (!%p541_p3), %v766_v18, %v764_v17  ;;  %vm2060_vm5 = vmmov (!%p541_p3), 1  }
   0xb   : > { %1858 = vmatprep.subr.bf16.mxu0 (!%p541_p3), %v1857_v9  ;;  %v1865_v25 = vpack.c.bf16 (!%p541_p3), %v771_v21, %v769_v20  ;;  %v768_v26 = vld [vmem:[%s2478_s1 + $0x60] sm:$0xff] (!%p541_p3)  ;;  %v770_v27 = vld [vmem:[%s2478_s1 + $0x70] sm:$0xff] (!%p541_p3)  ;;  %v773_v28 = vld [vmem:[%s2478_s1 + $0x88] sm:$0xff] (!%p541_p3) }
   0xc   : > { %v775_v29 = vld [vmem:[%s2478_s1 + $0x98] sm:$0xff] (!%p541_p3)  ;;  %v1867_v30 = vpack.c.bf16 (!%p541_p3), %v770_v27, %v768_v26  ;;  %v772_v32 = vld [vmem:[%s2478_s1 + $0x80] sm:$0xff] (!%p541_p3)  ;;  %v774_v33 = vld [vmem:[%s2478_s1 + $0x90] sm:$0xff] (!%p541_p3) }
   0xd   : > { %v1869_v31 = vpack.c.bf16 (!%p541_p3), %v775_v29, %v773_v28  ;;  %v1871_v34 = vpack.c.bf16 (!%p541_p3), %v774_v33, %v772_v32  ;;  %v777_v35 = vld [vmem:[%s2478_s1 + $0xa8] sm:$0x1] (!%p541_p3)  ;;  %v715_v37 = vld [vmem:[%s2477_s0 + $0x18] sm:$0xff] (!%p541_p3)  ;;  %v712_v38 = vld [vmem:[%s2477_s0] sm:$0xff] (!%p541_p3) }
   0xe   : > { %s2506_s18 = smov (!%p655_p4, %s2048_s18), 1  ;;  %1860 = vmatpush1.bf16.msra.mxu0 %v1859_v14  ;;  %v713_v36 = vld [vmem:[%s2477_s0 + $0x8] sm:$0xff]  ;;  %v714_v39 = vld [vmem:[%s2477_s0 + $0x10] sm:$0xff]  ;;  %v719_v41 = vld [vmem:[%s2477_s0 + $0x38] sm:$0xff] }
   0xf   : > { %s2194_s16 = sshll.u32 %s2506_s18, 3  ;;  %1862 = vmatprep.subr.bf16.mxu0 %v1861_v16  ;;  %s2493_s24 = sshll.u32 %s2506_s18, 2  ;;  %v717_v40 = vld [vmem:[%s2477_s0 + $0x28] sm:$0xff]  ;;  %v776_v42 = vld [vmem:[%s2478_s1 + $0xa0] sm:$0x1]  ;;  %v1873_v43 = vpack.c.bf16 %v715_v37, %v713_v36  ;;  %v1875_v45 = vpack.c.bf16 %v714_v39, %v712_v38  ;;  %v718_v48 = vld [vmem:[%s2477_s0 + $0x30] sm:$0xff] }
  0x10   : > { %s662_s23 = scalar_lea.vmem %s2496_s2, %s2194_s16  ;;  %s682_s22 = scalar_lea.vmem %s2482_s5, %s2493_s24  ;;  %v1877_v46 = vpack.c.bf16 %v719_v41, %v717_v40  ;;  %v716_v47 = vld [vmem:[%s2477_s0 + $0x20] sm:$0xff]  ;;  %v721_v50 = vld [vmem:[%s2477_s0 + $0x48] sm:$0xff]  ;;  %v723_v51 = vld [vmem:[%s2477_s0 + $0x58] sm:$0xff] }
  0x11   : > { %v945_v19 = vld [vmem:[%s662_s23] sm:$0xff]  ;;  %s678_s24 = scalar_lea.vmem %s2481_s4, %s2194_s16  ;;  %v1879_v54 = vpack.c.bf16 %v718_v48, %v716_v47  ;;  %s687_s25 = scalar_lea.vmem %s2483_s6, %s2194_s16  ;;  %v1881_v55 = vpack.c.bf16 %v723_v51, %v721_v50  ;;  %v722_v57 = vld [vmem:[%s2477_s0 + $0x50] sm:$0xff]  ;;  %v725_v58 = vld [vmem:[%s2477_s0 + $0x68] sm:$0xff] }
  0x12   : > { %v947_v22 = vcombine.high %v945_v19, %v945_v19  ;;  %1864 = vmatpush1.bf16.msra.mxu0 %v1863_v24  ;;  %v779_v44 = vld [vmem:[%s682_s22] sm:$0xf]  ;;  %s2497_s26 = sshll.u32 %s2506_s18, 2  ;;  %v727_v59 = vld [vmem:[%s2477_s0 + $0x78] sm:$0xff]  ;;  %v726_v2 = vld [vmem:[%s2477_s0 + $0x70] sm:$0xff]  ;;  %s672_s23 = scalar_lea.vmem %s2480_s3, %s2194_s16 }
  0x13   : > { %1866 = vmatprep.subr.bf16.mxu0 %v1865_v25  ;;  %v2278_v49 = vld [vmem:[%s678_s24] sm:$0xff]  ;;  %s691_s28 = scalar_lea.vmem %s2484_s7, %s2497_s26  ;;  %v1885_v0 = vpack.c.bf16 %v727_v59, %v725_v58  ;;  %v731_v4 = vld [vmem:[%s2477_s0 + $0x98] sm:$0xff]  ;;  %v730_v10 = vld [vmem:[%s2477_s0 + $0x90] sm:$0xff]  ;;  %s710_s17 = scalar_lea.vmem %s2492_s15, %s2194_s16 }
  0x14   : > { %1822 = vmatprep.subr.msk.mxu1 %vm952_vm0, %v947_v22  ;;  %v863_v52 = vcombine.high %v2278_v49, %v2278_v49  ;;  %v1030_v53 = vld [vmem:[%s2486_s9] sm:$0xf]  ;;  %v733_v11 = vld [vmem:[%s2477_s0 + $0xa8] sm:$0xff]  ;;  %v735_v12 = vld [vmem:[%s2477_s0 + $0xb8] sm:$0xff]  ;;  %s700_s18 = scalar_lea.vmem %s2491_s14, %s2194_s16 }
  0x15   : > { %1823 = vmatpush1.msk.msra.mxu1 %vm952_vm0, %v945_v19  ;;  %v720_v56 = vld [vmem:[%s2477_s0 + $0x40] sm:$0xff]  ;;  %1033 = vperm.xlu0 %2020, %v1030_v53   ;;  %v737_v17 = vld [vmem:[%s2477_s0 + $0xc8] sm:$0xff]  ;;  %v739_v18 = vld [vmem:[%s2477_s0 + $0xd8] sm:$0xff] }
  0x16   : > { %1824 = vmatmul.mubr.msk.f32.vlgmr.msra.gmra.mrb[0].mxu1 %vm948_vm1, %v944_v23  ;;  %1920 = vmatprep.subr.bf16.mxu1 %v1853_v3  ;;  %v2316_v60 = vld [vmem:[%s687_s25] sm:$0xff]  ;;  %v1883_v62 = vpack.c.bf16 %v722_v57, %v720_v56  ;;  %v729_v3 = vld [vmem:[%s2477_s0 + $0x88] sm:$0xff]  ;;  %v1897_v20 = vpack.c.bf16 %v739_v18, %v737_v17  ;;  %v738_v22 = vld [vmem:[%s2477_s0 + $0xd0] sm:$0xff] }
  0x17   : > { %1922 = vmatpush1.bf16.msra.mxu1 %v1855_v8  ;;  %1109 = vmatprep.mubr.f32.mxu1 %v2058_v7  ;;  %v1275_v61 = vld [vmem:[%s2488_s11] sm:$0xf]  ;;  %v1117_v5 = vcombine.high %v2316_v60, %v2316_v60  ;;  %v1889_v8 = vpack.c.bf16 %v731_v4, %v729_v3  ;;  %v741_v23 = vld [vmem:[%s2477_s0 + $0xe8] sm:$0xff]  ;;  %v742_v28 = vld [vmem:[%s2477_s0 + $0xf0] sm:$0xff] }
  0x18   : > { %1924 = vmatprep.subr.bf16.mxu1 %v1857_v9  ;;  %1868 = vmatpush1.bf16.msra.mxu0 %v1867_v30  ;;  %v1041_v63 = vld [vmem:[%s691_s28] sm:$0xf]  ;;  %v745_v29 = vld [vmem:[%s2477_s0 + $0x108] sm:$0xff]  ;;  %v751_v36 = vld [vmem:[%s2477_s0 + $0x138] sm:$0xff] }
  0x19   : > { %1870 = vmatprep.subr.bf16.mxu0 %v1869_v31  ;;  %v724_v1 = vld [vmem:[%s2477_s0 + $0x60] sm:$0xff]  ;;  %1278 = vperm.xlu0 %2020, %v1275_v61   ;;  %v750_v40 = vld [vmem:[%s2477_s0 + $0x130] sm:$0xff]  ;;  %v753_v41 = vld [vmem:[%s2477_s0 + $0x148] sm:$0xff] }
  0x1a   : > { %v1887_v6 = vpack.c.bf16 %v726_v2, %v724_v1  ;;  %v728_v9 = vld [vmem:[%s2477_s0 + $0x80] sm:$0xff]  ;;  %vm2417_vm6 = vmpackc.low %vm784_vm2, %vm2060_vm5 }
  0x1b   : > { %1926 = vmatpush1.bf16.msra.mxu1 %v1859_v14  ;;  %v1891_v13 = vpack.c.bf16 %v730_v10, %v728_v9  ;;  %v1893_v14 = vpack.c.bf16 %v735_v12, %v733_v11  ;;  %v732_v15 = vld [vmem:[%s2477_s0 + $0xa0] sm:$0xff] }
  0x1c   : > { %1928 = vmatprep.subr.bf16.mxu1 %v1861_v16  ;;  %1872 = vmatpush1.bf16.msra.mxu0 %v1871_v34  ;;  %v734_v16 = vld [vmem:[%s2477_s0 + $0xb0] sm:$0xff]  ;;  %v736_v21 = vld [vmem:[%s2477_s0 + $0xc0] sm:$0xff] }
  0x1d   : > { %1816 = vmatprep.subr.msk.mxu0 %vm784_vm2, %v777_v35  ;;  %v1895_v19 = vpack.c.bf16 %v734_v16, %v732_v15  ;;  %v740_v27 = vld [vmem:[%s2477_s0 + $0xe0] sm:$0xff] }
  0x1e   : > { %v744_v33 = vld [vmem:[%s2477_s0 + $0x100] sm:$0xff] }
  0x1f   : > { %1930 = vmatpush1.bf16.msra.mxu1 %v1863_v24  ;;  %v743_v24 = vld [vmem:[%s2477_s0 + $0xf8] sm:$0xff]  ;;  %v748_v39 = vld [vmem:[%s2477_s0 + $0x120] sm:$0xff] }
  0x20   : > { %1932 = vmatprep.subr.bf16.mxu1 %v1865_v25  ;;  %1817 = vmatpush1.msk.msra.mxu0 %vm784_vm2, %v776_v42  ;;  %v1899_v25 = vpack.c.bf16 %v738_v22, %v736_v21  ;;  %v1901_v26 = vpack.c.bf16 %v743_v24, %v741_v23  ;;  %v1192_v50 = vld [vmem:[%s672_s23] sm:$0xff] }
  0x21   : > { %1874 = vmatprep.subr.bf16.mxu0 %v1873_v43  ;;  %1818 = vmatmul.mubr.msk.f32.vlgmr.msra.gmra.mrb[0].mxu0 %vm780_vm3, %v779_v44  ;;  %v1194_v51 = vcombine.high %v1192_v50, %v1192_v50 }
  0x22   : > { %1876 = vmatpush1.bf16.msra.mxu0 %v1875_v45  ;;  %1821 = vmatprep.mubr.msk.f32.mxu0 %vm864_vm4, %v863_v52  ;;  %v1286_v52 = vld [vmem:[%s2490_s13] sm:$0xf] }
  0x23   : > { %1934 = vmatpush1.bf16.msra.mxu1 %v1867_v30  ;;  %1878 = vmatprep.subr.bf16.mxu0 %v1877_v46  ;;  %v747_v30 = vld [vmem:[%s2477_s0 + $0x118] sm:$0xff] }
  0x24   : > { %1936 = vmatprep.subr.bf16.mxu1 %v1869_v31  ;;  %v1903_v31 = vpack.c.bf16 %v742_v28, %v740_v27  ;;  %v1905_v32 = vpack.c.bf16 %v747_v30, %v745_v29  ;;  %1448 = vperm.xlu1 %2021, %v1286_v52  }
  0x26   : > { %1880 = vmatpush1.bf16.msra.mxu0 %v1879_v54 }
  0x27   : > { %1938 = vmatpush1.bf16.msra.mxu1 %v1871_v34  ;;  %1882 = vmatprep.subr.bf16.mxu0 %v1881_v55  ;;  %v746_v34 = vld [vmem:[%s2477_s0 + $0x110] sm:$0xff] }
  0x28   : > { %1825 = vmatprep.subr.msk.mxu1 %vm784_vm2, %v777_v35  ;;  %v749_v35 = vld [vmem:[%s2477_s0 + $0x128] sm:$0xff]  ;;  %v1907_v37 = vpack.c.bf16 %v746_v34, %v744_v33 }
  0x29   : > { %v1909_v38 = vpack.c.bf16 %v751_v36, %v749_v35 }
  0x2a   : > { %1884 = vmatpush1.bf16.msra.mxu0 %v1883_v62 }
  0x2b   : > { %1826 = vmatpush1.msk.msra.mxu1 %vm784_vm2, %v776_v42  ;;  %1886 = vmatprep.subr.bf16.mxu0 %v1885_v0  ;;  %v755_v42 = vld [vmem:[%s2477_s0 + $0x158] sm:$0x1] }
  0x2c   : > { %1940 = vmatprep.subr.bf16.mxu1 %v1873_v43  ;;  %1827 = vmatmul.mubr.msk.f32.vlgmr.msra.gmra.mrb[2].mxu1 %vm780_vm3, %v1041_v63  ;;  %v1911_v43 = vpack.c.bf16 %v750_v40, %v748_v39  ;;  %v1913_v44 = vpack.c.bf16 %v755_v42, %v753_v41 }
  0x2d   : > { %1942 = vmatpush1.bf16.msra.mxu1 %v1875_v45  ;;  %1830 = vmatprep.mubr.msk.f32.mxu1 %vm864_vm4, %v1117_v5  ;;  %v752_v45 = vld [vmem:[%s2477_s0 + $0x140] sm:$0xff] }
  0x2e   : > { %1944 = vmatprep.subr.bf16.mxu1 %v1877_v46  ;;  %1888 = vmatpush1.bf16.msra.mxu0 %v1887_v6  ;;  %v754_v46 = vld [vmem:[%s2477_s0 + $0x150] sm:$0x1] }
  0x2f   : > { %1890 = vmatprep.subr.bf16.mxu0 %v1889_v8  ;;  %v1916_v48 = vpack.c.bf16 %v754_v46, %v752_v45 }
  0x31   : > { %1946 = vmatpush1.bf16.msra.mxu1 %v1879_v54 }
  0x32   : > { %1948 = vmatprep.subr.bf16.mxu1 %v1881_v55  ;;  %1892 = vmatpush1.bf16.msra.mxu0 %v1891_v13 }
  0x33   : > { %1894 = vmatprep.subr.bf16.mxu0 %v1893_v14 }
  0x35   : > { %1950 = vmatpush1.bf16.msra.mxu1 %v1883_v62 }
  0x36   : > { %1952 = vmatprep.subr.bf16.mxu1 %v1885_v0  ;;  %1896 = vmatpush1.bf16.msra.mxu0 %v1895_v19  ;;  %v1285_v0 = vld [vmem:[%s2489_s12] sm:$0xf] }
  0x37   : > { %1898 = vmatprep.subr.bf16.mxu0 %v1897_v20 }
  0x39   : > { %1954 = vmatpush1.bf16.msra.mxu1 %v1887_v6 }
  0x3a   : > { %1956 = vmatprep.subr.bf16.mxu1 %v1889_v8  ;;  %1900 = vmatpush1.bf16.msra.mxu0 %v1899_v25 }
  0x3b   : > { %1902 = vmatprep.subr.bf16.mxu0 %v1901_v26 }
  0x3d   : > { %1958 = vmatpush1.bf16.msra.mxu1 %v1891_v13 }
  0x3e   : > { %1960 = vmatprep.subr.bf16.mxu1 %v1893_v14  ;;  %1904 = vmatpush1.bf16.msra.mxu0 %v1903_v31 }
  0x3f   : > { %1906 = vmatprep.subr.bf16.mxu0 %v1905_v32 }
  0x41   : > { %1962 = vmatpush1.bf16.msra.mxu1 %v1895_v19 }
  0x42   : > { %1964 = vmatprep.subr.bf16.mxu1 %v1897_v20  ;;  %1908 = vmatpush1.bf16.msra.mxu0 %v1907_v37 }
  0x43   : > { %1910 = vmatprep.subr.bf16.mxu0 %v1909_v38 }
  0x45   : > { %1966 = vmatpush1.bf16.msra.mxu1 %v1899_v25 }
  0x46   : > { %1968 = vmatprep.subr.bf16.mxu1 %v1901_v26  ;;  %1912 = vmatpush1.bf16.msra.mxu0 %v1911_v43 }
  0x47   : > { %1915 = vmatprep.subr.msk.bf16.mxu0 %vm2417_vm6, %v1913_v44 }
  0x49   : > { %1970 = vmatpush1.bf16.msra.mxu1 %v1903_v31 }
  0x4a   : > { %1972 = vmatprep.subr.bf16.mxu1 %v1905_v32  ;;  %1918 = vmatpush1.bf16.msk.msra.mxu0 %vm2417_vm6, %v1916_v48 }
  0x4d   : > { %1974 = vmatpush1.bf16.msra.mxu1 %v1907_v37  ;;  %938 = vmatmul.mubr.f32.vlgmr.msra.gmra.mrb[0].mxu0 %v2278_v49  ;;  %v1191_v49 = vld [vmem:[%s2487_s10] sm:$0xf] }
  0x4e   : > { %1976 = vmatprep.subr.bf16.mxu1 %v1909_v38  ;;  %1360 = vmatprep.mubr.f32.mxu0 %v2058_v7 }
  0x51   : > { %1978 = vmatpush1.bf16.msra.mxu1 %v1911_v43 }
  0x52   : > { %1981 = vmatprep.subr.msk.bf16.mxu1 %vm2417_vm6, %v1913_v44 }
  0x55   : > { %1984 = vmatpush1.bf16.msk.msra.mxu1 %vm2417_vm6, %v1916_v48 }
  0x56   : > { %1831 = vmatprep.subr.msk.mxu1 %vm952_vm0, %v1194_v51 }
  0x58   : > { %1185 = vmatmul.mubr.f32.vlgmr.msra.gmra.mrb[2].mxu1 %v2316_v60 }
  0x59   : > { %1832 = vmatpush1.msk.msra.mxu1 %vm952_vm0, %v1192_v50  ;;  %1266 = vmatprep.mubr.f32.mxu1 %v2058_v7 }
  0x60   : > { %1833 = vmatmul.mubr.msk.f32.vlgmr.msra.gmra.mrb[2].mxu1 %vm948_vm1, %v1191_v49 }
  0x61   : > { %1437 = vmatprep.mubr.f32.mxu1 %v2058_v7 }
  0x94   : > { %v1034_v56 = vpop.permute.xlu0 %1033 }
  0x98   : > { %v1279_v1 = vpop.permute.xlu0 %1278 }
  0xa3   : > { %v1449_v14 = vpop.permute.xlu1 %1448 }
  0xe9   : > { %v1023_v53 = vpop.f32.mrb[0].mxu1 }
  0xea   : > { %v1025_v54 = vpop.f32.mrb[1].mxu1 }
 0x120   : > { %v939_v55 = vpop.f32.mrb[0].mxu0 }
 0x121   : > { %v1985_v57 = vadd.f32 %v1023_v53, %v939_v55  ;;  %v941_v58 = vpop.f32.mrb[1].mxu0 }
 0x122   : > { %v1986_v59 = vadd.f32 %v1025_v54, %v941_v58 }
 0x123   : > { %v1036_v60 = vadd.f32 %v1985_v57, %v1034_v56 }
 0x124   : > { %v1037_v61 = vadd.f32 %v1986_v59, %v1034_v56 }
 0x125   : > { %v1038_v63 = vmax.f32 %v1036_v60, 0.0 }
 0x126   : > { %v1039_v62 = vmax.f32 %v1037_v61, 0.0 }
 0x128   : > { %1837 = vmatprep.subr.msk.mxu1 %vm952_vm0, %v1039_v62 }
 0x129   : > { %1838 = vmatpush1.msk.msra.mxu1 %vm952_vm0, %v1038_v63 }
 0x12a   : > { %1839 = vmatmul.mubr.msk.f32.vlgmr.msra.gmra.mrb[4].mxu1 %vm948_vm1, %v1285_v0 }
 0x133   : > { %v1268_v2 = vpop.f32.mrb[2].mxu1 }
 0x134   : > { %v1281_v3 = vadd.f32 %v1279_v1, %v1268_v2  ;;  %v1270_v4 = vpop.f32.mrb[3].mxu1 }
 0x135   : > { %v1282_v5 = vadd.f32 %v1279_v1, %v1270_v4 }
 0x136   : > { %v1283_v6 = vmax.f32 %v1281_v3, 0.0 }
 0x137   : > { %v1284_v8 = vmax.f32 %v1282_v5, 0.0 }
 0x138   : > { %v1465_v9 = vsub.f32 %v1283_v6, %v1038_v63 }
 0x139   : > { %v1466_v10 = vsub.f32 %v1284_v8, %v1039_v62  ;;  %1834 = vmatprep.subr.msk.mxu0 %vm952_vm0, %v1284_v8 }
 0x13a   : > { %1835 = vmatpush1.msk.msra.mxu0 %vm952_vm0, %v1283_v6 }
 0x13b   : > { %1836 = vmatmul.mubr.msk.f32.vlgmr.msra.gmra.mrb[2].mxu0 %vm948_vm1, %v1285_v0 }
 0x13c   : > { %1539 = vmatprep.mubr.f32.mxu0 %v2058_v7 }
 0x1fd   : > { %v1439_v11 = vpop.f32.mrb[4].mxu1 }
 0x1fe   : > { %v1441_v12 = vpop.f32.mrb[5].mxu1 }
 0x20e   : > { %v1362_v13 = vpop.f32.mrb[2].mxu0 }
 0x20f   : > { %v1444_v15 = vsub.f32 %v1362_v13, %v1439_v11  ;;  %v1364_v16 = vpop.f32.mrb[3].mxu0 }
 0x210   : > { %v1445_v17 = vsub.f32 %v1364_v16, %v1441_v12 }
 0x211   : > { %v1451_v18 = vadd.f32 %v1449_v14, %v1444_v15 }
 0x212   : > { %v1452_v19 = vadd.f32 %v1449_v14, %v1445_v17 }
 0x213   : > { %v1840_v20 = vmul.f32 -1.442695, %v1451_v18 }
 0x214   : > { %v1841_v21 = vmul.f32 -1.442695, %v1452_v19 }
 0x215   : > { %2026 = vpow2.f32 %v1840_v20 }
 0x216   : > { %2028 = vpow2.f32 %v1841_v21 }
 0x21f   : > { %v2027_v22 = vpop.eup %2026 }
 0x220   : > { %v2029_v23 = vpop.eup %2028  ;;  %v1459_v24 = vadd.f32 1.0, %v2027_v22 }
 0x221   : > { %v1460_v25 = vadd.f32 1.0, %v2029_v23 }
 0x222   : > { %2030 = vrcp.f32 %v1459_v24 }
 0x223   : > { %2032 = vrcp.f32 %v1460_v25 }
 0x22c   : > { %v2031_v7 = vpop.eup %2030 }
 0x22d   : > { %v2033_v26 = vpop.eup %2032  ;;  %v1467_v27 = vmul.f32 %v2031_v7, %v1465_v9 }
 0x22e   : > { %v1468_v28 = vmul.f32 %v2033_v26, %v1466_v10 }
 0x230   : > { %1842 = vmatprep.subr.msk.mxu0 %vm952_vm0, %v1468_v28 }
 0x231   : > { %1843 = vmatpush1.msk.msra.mxu0 %vm952_vm0, %v1467_v27 }
 0x232   : > { %1844 = vmatmul.mubr.msk.f32.vlgmr.msra.gmra.mrb[4].mxu0 %vm948_vm1, %v1285_v0 }
 0x305   : > { %v1541_v29 = vpop.f32.mrb[4].mxu0 }
 0x306   : > { %v1546_v30 = vadd.f32 %v1541_v29, %v1449_v14  ;;  %v1553_v31 = vadd.f32 %v1541_v29, %v1362_v13  ;;  %v1543_v32 = vpop.f32.mrb[5].mxu0 }
 0x307   : > { %v1547_v33 = vadd.f32 %v1543_v32, %v1449_v14  ;;  %v1554_v34 = vadd.f32 %v1543_v32, %v1364_v16 }
 0x308   : > { %v1555_v35 = vadd.f32 %v1553_v31, %v1449_v14 }
 0x309   : > { %v1550_v36 = vcombine.low %v1546_v30, %v1547_v33  ;;  %v1556_v37 = vadd.f32 %v1554_v34, %v1449_v14 }
 0x30b   : > { %1552 = vst [vmem:[%s710_s17] sm:$0xff] %v1550_v36  ;;  %v1559_v38 = vcombine.low %v1555_v35, %v1556_v37 }
 0x30d   : > { %1561 = vst [vmem:[%s700_s18] sm:$0xff] %v1559_v38 }
 0x30e PF: > { %s26_s20 = sadd.s32 1, %s2056_s20   ;;  %s2500_s23 = sld [smem:[#allocation2_spill]] }
 0x30f   : > { %p23_p5 = scmp.ge.s32.totalorder %s26_s20, 4   ;;  %s2501_s18 = smov %s2052_s19 }
 0x311   :  { %25 = sbr.rel (!%p23_p5) target bundleno = 2 (0x2), region = 139 }
 0x314   : > { %s2502_s19 = smov %s2500_s23 }

</bundles_post_ra>
